<compile_context>
chip_gen: v7x
topology: tpu7x:2x2x1
jax: 0.10.0
libtpu: 0.0.40
codegen_flags: <defaults>
</compile_context>

<pallas_src>
import functools
import math

import jax
import jax.numpy as jnp
import numpy as np
from jax.experimental import pallas as pl
from jax.experimental.pallas import tpu as pltpu


# ------------------------------ small helpers -------------------------------

def _round_up(x, m):
    return ((x + m - 1) // m) * m


def _pad2d(a, rows, cols):
    pr, pc = rows - a.shape[0], cols - a.shape[1]
    if pr == 0 and pc == 0:
        return a
    return jnp.pad(a, ((0, pr), (0, pc)))


# ------------------------------- linear (MXU) --------------------------------

def _matmul_kernel(*refs, apply_relu, has_residual):
    if has_residual:
        x_ref, w_ref, b_ref, r_ref, o_ref, acc_ref = refs
    else:
        x_ref, w_ref, b_ref, o_ref, acc_ref = refs
        r_ref = None

    @pl.when(pl.program_id(2) == 0)
    def _init():
        acc_ref[...] = jnp.zeros_like(acc_ref)

    acc_ref[...] += jnp.dot(x_ref[...], w_ref[...],
                            preferred_element_type=jnp.float32)

    @pl.when(pl.program_id(2) == pl.num_programs(2) - 1)
    def _finalize():
        r = acc_ref[...] + b_ref[...]
        if apply_relu:
            r = jnp.maximum(r, 0.0)
        if has_residual:
            r = r + r_ref[...].astype(jnp.float32)
        o_ref[...] = r.astype(o_ref.dtype)


def linear(x, w, b, *, activation=None, residual=None, out_dtype=jnp.bfloat16,
           tm=512, tn=512, tk=1024):
    """y = x @ w + b (+ residual).  Tiled, pipelined, f32 accumulation."""
    lead = x.shape[:-1]
    K, N = w.shape
    x2 = x.reshape(-1, K).astype(jnp.bfloat16)
    M = x2.shape[0]

    bm = M if M <= tm else tm
    bn = N if N <= tn else tn
    bk = K if K <= tk else tk
    Mp, Np, Kp = _round_up(M, bm), _round_up(N, bn), _round_up(K, bk)

    # Weights are created bf16 at init, so these casts/pads are no-ops here.
    xp = _pad2d(x2, Mp, Kp)
    wp = _pad2d(w.astype(jnp.bfloat16), Kp, Np)
    bp = _pad2d(b.reshape(1, N).astype(jnp.float32), 1, Np)

    args = [xp, wp, bp]
    in_specs = [
        pl.BlockSpec((bm, bk), lambda i, j, k: (i, k)),
        pl.BlockSpec((bk, bn), lambda i, j, k: (k, j)),
        pl.BlockSpec((1, bn), lambda i, j, k: (0, j)),
    ]
    has_residual = residual is not None
    if has_residual:
        rp = _pad2d(residual.reshape(-1, N), Mp, Np)
        args.append(rp)
        in_specs.append(pl.BlockSpec((bm, bn), lambda i, j, k: (i, j)))

    bytes_accessed = (M * K + K * N + M * N) * 2 + N * 4
    if has_residual:
        bytes_accessed += M * N * 2

    out = pl.pallas_call(
        functools.partial(_matmul_kernel, apply_relu=(activation == "relu"),
                          has_residual=has_residual),
        out_shape=jax.ShapeDtypeStruct((Mp, Np), out_dtype),
        grid=(Mp // bm, Np // bn, Kp // bk),
        in_specs=in_specs,
        out_specs=pl.BlockSpec((bm, bn), lambda i, j, k: (i, j)),
        scratch_shapes=[pltpu.VMEM((bm, bn), jnp.float32)],
        compiler_params=pltpu.CompilerParams(
            dimension_semantics=("parallel", "parallel", "arbitrary")),
        cost_estimate=pl.CostEstimate(flops=2 * M * N * K, transcendentals=0,
                                      bytes_accessed=bytes_accessed),
    )(*args)
    if Mp != M or Np != N:
        out = out[:M, :N]
    return out.reshape(lead + (N,))


# -------------------------------- layernorm ----------------------------------

def _layernorm_kernel(x_ref, g_ref, b_ref, o_ref):
    x = x_ref[...].astype(jnp.float32)
    mean = jnp.mean(x, axis=-1, keepdims=True)
    var = jnp.mean(jnp.square(x - mean), axis=-1, keepdims=True)
    y = (x - mean) * jax.lax.rsqrt(var + 1e-5)
    o_ref[...] = (y * g_ref[...] + b_ref[...]).astype(o_ref.dtype)


def layernorm(x, g, b, *, block_rows=256):
    # TODO(synk): fuse LN stats into the consuming matmul prologue when K fits one tile.
    lead = x.shape[:-1]
    D = x.shape[-1]
    x2 = x.reshape(-1, D)
    M = x2.shape[0]
    bm = M if M <= block_rows else block_rows
    Mp = _round_up(M, bm)
    xp = x2 if Mp == M else jnp.pad(x2, ((0, Mp - M), (0, 0)))
    out = pl.pallas_call(
        _layernorm_kernel,
        out_shape=jax.ShapeDtypeStruct((Mp, D), jnp.bfloat16),
        grid=(Mp // bm,),
        in_specs=[
            pl.BlockSpec((bm, D), lambda i: (i, 0)),
            pl.BlockSpec((1, D), lambda i: (0, 0)),
            pl.BlockSpec((1, D), lambda i: (0, 0)),
        ],
        out_specs=pl.BlockSpec((bm, D), lambda i: (i, 0)),
        compiler_params=pltpu.CompilerParams(dimension_semantics=("parallel",)),
    )(xp, g.reshape(1, D).astype(jnp.float32), b.reshape(1, D).astype(jnp.float32))
    if Mp != M:
        out = out[:M]
    return out.reshape(lead + (D,))


# -------------------------- flash attention kernel ---------------------------

def _flash_attention_kernel(*refs, nhead, num_kv, scale, has_mask, has_kpm,
                            causal, use_rope):
    i = 0
    q_ref = refs[i]; i += 1
    k_ref = refs[i]; i += 1
    v_ref = refs[i]; i += 1
    mask_ref = kpm_ref = None
    cosq_ref = sinq_ref = cosk_ref = sink_ref = None
    if has_mask:
        mask_ref = refs[i]; i += 1
    if has_kpm:
        kpm_ref = refs[i]; i += 1
    if use_rope:
        cosq_ref, sinq_ref, cosk_ref, sink_ref = refs[i:i + 4]; i += 4
    o_ref = refs[i]; i += 1
    m_sc, l_sc, acc_sc = refs[i], refs[i + 1], refs[i + 2]

    ki = pl.program_id(2)
    bq = q_ref.shape[1]
    bk = k_ref.shape[1]
    D = q_ref.shape[2]
    Dh = D // nhead
    half = Dh // 2
    rep = nhead // num_kv

    @pl.when(ki == 0)
    def _init():
        m_sc[...] = jnp.full(m_sc.shape, -jnp.inf, jnp.float32)
        l_sc[...] = jnp.zeros(l_sc.shape, jnp.float32)
        acc_sc[...] = jnp.zeros(acc_sc.shape, jnp.float32)

    q = q_ref[0]            # (bq, nhead*Dh)  bf16
    k = k_ref[0]            # (bk, num_kv*Dh) bf16
    v = v_ref[0]            # (bk, num_kv*Dh) bf16

    # Combined "attend allowed" mask, built once per step and shared by heads.
    allowed = None
    if has_mask:
        allowed = mask_ref[0].astype(jnp.float32) > 0.0            # (bq, bk)
    if has_kpm:
        kp_ok = kpm_ref[0].astype(jnp.float32) == 0.0               # (1, bk)
        kp_ok = jnp.broadcast_to(kp_ok, (bq, bk))
        allowed = kp_ok if allowed is None else (allowed & kp_ok)
    if causal:
        rows = jax.lax.broadcasted_iota(jnp.int32, (bq, bk), 0) + pl.program_id(1) * bq
        cols = jax.lax.broadcasted_iota(jnp.int32, (bq, bk), 1) + ki * bk
        c_ok = rows >= cols
        allowed = c_ok if allowed is None else (allowed & c_ok)

    if use_rope:
        cos_q, sin_q = cosq_ref[...], sinq_ref[...]                 # (bq, half) f32
        cos_k, sin_k = cosk_ref[...], sink_ref[...]                 # (bk, half) f32

    for g in range(num_kv):
        kg = k[:, g * Dh:(g + 1) * Dh]
        vg = v[:, g * Dh:(g + 1) * Dh]
        if use_rope:
            k1 = kg[:, :half].astype(jnp.float32)
            k2 = kg[:, half:].astype(jnp.float32)
            kg = jnp.concatenate([k1 * cos_k - k2 * sin_k,
                                  k2 * cos_k + k1 * sin_k], axis=-1
                                 ).astype(jnp.bfloat16)
        for r in range(rep):
            h = g * rep + r
            qh = q[:, h * Dh:(h + 1) * Dh]
            if use_rope:
                q1 = qh[:, :half].astype(jnp.float32)
                q2 = qh[:, half:].astype(jnp.float32)
                qh = jnp.concatenate([(q1 * cos_q - q2 * sin_q) * scale,
                                      (q2 * cos_q + q1 * sin_q) * scale], axis=-1
                                     ).astype(jnp.bfloat16)
            else:
                qh = (qh.astype(jnp.float32) * scale).astype(jnp.bfloat16)

            s = jax.lax.dot_general(qh, kg, (((1,), (1,)), ((), ())),
                                    preferred_element_type=jnp.float32)   # (bq, bk)
            if allowed is not None:
                s = jnp.where(allowed, s, -1e9)

            m_prev = m_sc[h]                                          # (bq, 1)
            m_new = jnp.maximum(m_prev, jnp.max(s, axis=-1, keepdims=True))
            alpha = jnp.exp(m_prev - m_new)
            p = jnp.exp(s - m_new)
            l_sc[h] = alpha * l_sc[h] + jnp.sum(p, axis=-1, keepdims=True)
            acc_sc[h] = alpha * acc_sc[h] + jnp.dot(
                p.astype(vg.dtype), vg, preferred_element_type=jnp.float32)
            m_sc[h] = m_new

    @pl.when(ki == pl.num_programs(2) - 1)
    def _finalize():
        for h in range(nhead):
            inv = pl.reciprocal(l_sc[h], approx=True)                 # (bq, 1)
            o_ref[0, :, h * Dh:(h + 1) * Dh] = (acc_sc[h] * inv).astype(o_ref.dtype)


def attention(q, k, v, *, nhead, num_kv, scale, mask=None, key_padding_mask=None,
              causal=False, rope=False, bq_max=128, bk_max=128):
    """q: (B,Sq,nhead*Dh), k/v: (B,Sk,num_kv*Dh).
    mask: optional int8/bool (B,Sq,Sk) attend-allowed mask.
    key_padding_mask: optional int8/bool (B,Sk), nonzero = pad (blocked)."""
    B, Sq, D = q.shape
    Sk, Dkv = k.shape[1], k.shape[2]
    Dh = D // nhead

    bq = Sq if Sq <= bq_max else bq_max
    bk = Sk if Sk <= bk_max else bk_max
    Sqp, Skp = _round_up(Sq, bq), _round_up(Sk, bk)

    q = q.astype(jnp.bfloat16)
    k = k.astype(jnp.bfloat16)
    v = v.astype(jnp.bfloat16)
    if Sqp != Sq:
        q = jnp.pad(q, ((0, 0), (0, Sqp - Sq), (0, 0)))
    if Skp != Sk:
        k = jnp.pad(k, ((0, 0), (0, Skp - Sk), (0, 0)))
        v = jnp.pad(v, ((0, 0), (0, Skp - Sk), (0, 0)))
        if mask is None and key_padding_mask is None:
            key_padding_mask = jnp.zeros((B, Sk), jnp.int8)

    args = [q, k, v]
    in_specs = [
        pl.BlockSpec((1, bq, D), lambda b, qi, ki: (b, qi, 0)),
        pl.BlockSpec((1, bk, Dkv), lambda b, qi, ki: (b, ki, 0)),
        pl.BlockSpec((1, bk, Dkv), lambda b, qi, ki: (b, ki, 0)),
    ]
    has_mask = mask is not None
    has_kpm = key_padding_mask is not None
    mask_bytes = 0
    if has_mask:
        m = mask.astype(jnp.int8)
        if Sqp != Sq or Skp != Sk:
            m = jnp.pad(m, ((0, 0), (0, Sqp - Sq), (0, Skp - Sk)))   # 0 = blocked
        args.append(m)
        in_specs.append(pl.BlockSpec((1, bq, bk), lambda b, qi, ki: (b, qi, ki)))
        mask_bytes += B * Sqp * Skp
    if has_kpm:
        kp = key_padding_mask.astype(jnp.int8)
        if Skp != Sk:
            kp = jnp.pad(kp, ((0, 0), (0, Skp - Sk)), constant_values=1)
        kp = kp.reshape(B, 1, Skp)
        args.append(kp)
        in_specs.append(pl.BlockSpec((1, 1, bk), lambda b, qi, ki: (b, 0, ki)))
        mask_bytes += B * Skp
    if rope:
        assert Sq == Sk, "fused RoPE only used for self-attention"
        half = Dh // 2
        inv_freq = 1.0 / (10000.0 ** (jnp.arange(half, dtype=jnp.float32) / half))
        ang = jnp.arange(Sqp, dtype=jnp.float32)[:, None] * inv_freq[None, :]
        cos_t, sin_t = jnp.cos(ang), jnp.sin(ang)
        args += [cos_t, sin_t, cos_t, sin_t]
        in_specs += [
            pl.BlockSpec((bq, half), lambda b, qi, ki: (qi, 0)),
            pl.BlockSpec((bq, half), lambda b, qi, ki: (qi, 0)),
            pl.BlockSpec((bk, half), lambda b, qi, ki: (ki, 0)),
            pl.BlockSpec((bk, half), lambda b, qi, ki: (ki, 0)),
        ]

    kernel = functools.partial(
        _flash_attention_kernel, nhead=nhead, num_kv=num_kv, scale=scale,
        has_mask=has_mask, has_kpm=has_kpm, causal=causal, use_rope=rope)

    out = pl.pallas_call(
        kernel,
        out_shape=jax.ShapeDtypeStruct((B, Sqp, D), jnp.bfloat16),
        grid=(B, Sqp // bq, Skp // bk),
        in_specs=in_specs,
        out_specs=pl.BlockSpec((1, bq, D), lambda b, qi, ki: (b, qi, 0)),
        scratch_shapes=[pltpu.VMEM((nhead, bq, 1), jnp.float32),
                        pltpu.VMEM((nhead, bq, 1), jnp.float32),
                        pltpu.VMEM((nhead, bq, Dh), jnp.float32)],
        compiler_params=pltpu.CompilerParams(
            dimension_semantics=("parallel", "parallel", "arbitrary")),
        cost_estimate=pl.CostEstimate(
            flops=4 * B * nhead * Sqp * Skp * Dh,
            transcendentals=B * nhead * Sqp * Skp,
            bytes_accessed=(2 * B * Sqp * D + 2 * B * Skp * Dkv) * 2 + mask_bytes),
    )(*args)
    if Sqp != Sq:
        out = out[:, :Sq, :]
    return out


# -------------------------- word pooling (segment mean) ----------------------

def _word_pool_kernel(row_ref, start_ref, end_ref, x_ref, o_ref):
    del row_ref  # only used by the index_map
    w = pl.program_id(0)
    s = start_ref[w]
    e = end_ref[w]
    x = x_ref[0].astype(jnp.float32)                                  # (S, D)
    pos = jax.lax.broadcasted_iota(jnp.int32, x.shape, 0)
    valid = (pos >= s) & (pos < e)
    cnt = (e - s).astype(jnp.float32)
    o_ref[0] = jnp.sum(jnp.where(valid, x, 0.0), axis=0, keepdims=True) / cnt


def word_pooling(enc1, word_boundaries):
    """Mean-pool token vectors over word spans.  enc1: (R, S, D)."""
    R, S, D = enc1.shape
    rows, starts, ends = [], [], []
    for r, spans in enumerate(word_boundaries):
        for (s, e) in spans:
            rows.append(r); starts.append(s); ends.append(e)
    n = len(rows)
    rows = jnp.asarray(np.asarray(rows, np.int32))
    starts = jnp.asarray(np.asarray(starts, np.int32))
    ends = jnp.asarray(np.asarray(ends, np.int32))

    out = pl.pallas_call(
        _word_pool_kernel,
        out_shape=jax.ShapeDtypeStruct((n, 1, D), jnp.float32),
        grid_spec=pltpu.PrefetchScalarGridSpec(
            num_scalar_prefetch=3, grid=(n,),
            in_specs=[pl.BlockSpec((1, S, D), lambda w, rr, sr, er: (rr[w], 0, 0))],
            out_specs=pl.BlockSpec((1, 1, D), lambda w, rr, sr, er: (w, 0, 0))),
        compiler_params=pltpu.CompilerParams(dimension_semantics=("arbitrary",)),
    )(rows, starts, ends, enc1)
    return out.reshape(n, D)


# ----------------------------- masked mean pool ------------------------------

def _masked_mean_kernel(x_ref, m_ref, o_ref):
    x = x_ref[...].astype(jnp.float32)
    valid = m_ref[...]
    s = jnp.sum(x * valid, axis=1)
    c = jnp.maximum(jnp.sum(valid, axis=1), 1e-9)
    o_ref[...] = s / c


def masked_mean_pool(memory, key_padding_mask, *, block_rows=128):
    """memory: (B, S, D); key_padding_mask: (B, S), True = pad.  Returns (B, D)."""
    B, S, D = memory.shape
    valid = (~key_padding_mask).astype(jnp.float32).reshape(B, S, 1)
    bb = B if B <= block_rows else block_rows
    Bp = _round_up(B, bb)
    mem = memory if Bp == B else jnp.pad(memory, ((0, Bp - B), (0, 0), (0, 0)))
    val = valid if Bp == B else jnp.pad(valid, ((0, Bp - B), (0, 0), (0, 0)))
    out = pl.pallas_call(
        _masked_mean_kernel,
        out_shape=jax.ShapeDtypeStruct((Bp, D), jnp.float32),
        grid=(Bp // bb,),
        in_specs=[
            pl.BlockSpec((bb, S, D), lambda i: (i, 0, 0)),
            pl.BlockSpec((bb, S, 1), lambda i: (i, 0, 0)),
        ],
        out_specs=pl.BlockSpec((bb, D), lambda i: (i, 0)),
        compiler_params=pltpu.CompilerParams(dimension_semantics=("parallel",)),
    )(mem, val)
    return out[:B] if Bp != B else out


# ------------------------------- model glue ----------------------------------

def sinusoidal_positional_encoding(seq_len, d_model):
    pos = jnp.arange(seq_len, dtype=jnp.float32)[:, None]
    div = jnp.exp(
        jnp.arange(0, d_model, 2, dtype=jnp.float32) * (-math.log(10000.0) / d_model))
    pe = jnp.zeros((seq_len, d_model), jnp.float32)
    pe = pe.at[:, 0::2].set(jnp.sin(pos * div))
    pe = pe.at[:, 1::2].set(jnp.cos(pos * div))
    return pe


def gqa_self_attention(x, p, mask_i8, nhead, num_kv, residual):
    B, S, D = x.shape
    hd = D // nhead
    dkv = num_kv * hd
    qkv = linear(x, p["wqkv"], p["bqkv"])                  # fused Q|K|V projection
    q, k, v = qkv[..., :D], qkv[..., D:D + dkv], qkv[..., D + dkv:]
    o = attention(q, k, v, nhead=nhead, num_kv=num_kv, scale=1.0 / math.sqrt(hd),
                  mask=mask_i8, rope=True)
    return linear(o, p["wo"], p["bo"], residual=residual)


def transformer_encoder(x, layers, attn_mask, nhead, num_kv):
    # attn_mask: (B, S, S) bool, True = attention allowed (reference convention).
    mask_i8 = attn_mask.astype(jnp.int8)
    for p in layers:
        h = layernorm(x, p["ln1_g"], p["ln1_b"])
        x = gqa_self_attention(h, p, mask_i8, nhead, num_kv, residual=x)
        h = layernorm(x, p["ln2_g"], p["ln2_b"])
        x = linear(linear(h, p["w1"], p["b1"], activation="relu"),
                   p["w2"], p["b2"], residual=x)
    return x


def mha_self(x, p, tgt_kpm_i8, nhead, residual):
    D = x.shape[-1]
    hd = D // nhead
    qkv = linear(x, p["wqkv"], p["bqkv"])
    q, k, v = qkv[..., :D], qkv[..., D:2 * D], qkv[..., 2 * D:]
    o = attention(q, k, v, nhead=nhead, num_kv=nhead, scale=1.0 / math.sqrt(hd),
                  key_padding_mask=tgt_kpm_i8, causal=True)
    return linear(o, p["wo"], p["bo"], residual=residual)


def mha_cross(q_in, kv_in, p, mem_kpm_i8, nhead, residual):
    D = q_in.shape[-1]
    hd = D // nhead
    q = linear(q_in, p["wq"], p["bq"])
    kv = linear(kv_in, p["wkv"], p["bkv"])                 # fused K|V projection
    k, v = kv[..., :D], kv[..., D:]
    o = attention(q, k, v, nhead=nhead, num_kv=nhead, scale=1.0 / math.sqrt(hd),
                  key_padding_mask=mem_kpm_i8)
    return linear(o, p["wo"], p["bo"], residual=residual)


def transformer_decoder(tgt, memory, layers, tgt_kpm, mem_kpm, nhead):
    # nn.TransformerDecoderLayer(norm_first=True), activation=relu, eval (no dropout).
    tgt_kpm_i8 = tgt_kpm.astype(jnp.int8)
    mem_kpm_i8 = mem_kpm.astype(jnp.int8)
    x = tgt
    for p in layers:
        h = layernorm(x, p["ln1_g"], p["ln1_b"])
        x = mha_self(h, p["self_attn"], tgt_kpm_i8, nhead, residual=x)
        h = layernorm(x, p["ln2_g"], p["ln2_b"])
        x = mha_cross(h, memory, p["cross_attn"], mem_kpm_i8, nhead, residual=x)
        h = layernorm(x, p["ln3_g"], p["ln3_b"])
        x = linear(linear(h, p["w1"], p["b1"], activation="relu"),
                   p["w2"], p["b2"], residual=x)
    return x


def unpad_sequences_static(pooled_words, sequence_ids):
    """Group per-word vectors by (static) sequence id into (num_seqs, max_words, D)
    plus a key-padding mask (True = pad).  Index construction is host-side."""
    sid = np.asarray(sequence_ids)
    uniq = np.unique(sid)
    counts = [int(np.sum(sid == u)) for u in uniq]
    max_w = max(counts)
    gather_idx = np.zeros((len(uniq), max_w), np.int32)
    pad_mask = np.ones((len(uniq), max_w), bool)
    for i, u in enumerate(uniq):
        idx = np.nonzero(sid == u)[0]
        gather_idx[i, : len(idx)] = idx
        pad_mask[i, : len(idx)] = False
    D = pooled_words.shape[-1]
    out = jnp.take(pooled_words, jnp.asarray(gather_idx).reshape(-1), axis=0)
    out = out.reshape(len(uniq), max_w, D)
    out = out * jnp.asarray(~pad_mask, pooled_words.dtype)[..., None]
    return out, pad_mask


def flatten_and_filter_static(memory, pad_mask_np):
    B, S, D = memory.shape
    flat = memory.reshape(B * S, D)
    valid_idx = np.nonzero(~np.asarray(pad_mask_np).reshape(-1))[0]
    return jnp.take(flat, jnp.asarray(valid_idx), axis=0)[:, None, :]   # (N, 1, D)


def get_eos_mask(sequence_ids):
    sid = np.asarray(sequence_ids)
    mask = np.concatenate([sid[:-1] != sid[1:], np.array([True])])
    return ~mask


# ------------------------------ forward pass ---------------------------------

def encodzall_forward(params, cfg, x_tokens, sequence_ids, seq_target_ids,
                      seq_key_padding_mask, word_target_ids, word_key_padding_mask,
                      attention_mask, word_boundaries, return_embeddings_only=False):
    R, S = x_tokens.shape
    D = cfg["d_model"]
    emb = params["embedding"]

    embedded = jnp.take(emb, x_tokens, axis=0)

    enc1 = transformer_encoder(embedded, params["encoder1"], attention_mask,
                               cfg["nhead"], cfg["num_kv_heads_encoder1"])

    # WordPooling (mean over word boundaries) as a Pallas segment-mean kernel.
    pooled_words = word_pooling(enc1, word_boundaries)

    # UnpadSequences: regroup words by sequence id.
    enc1_unpadded, mem_kpm_np = unpad_sequences_static(pooled_words, sequence_ids)
    mem_kpm = jnp.asarray(mem_kpm_np)

    # key_padding_to_attention_mask
    mem_attn_mask = (~mem_kpm)[:, None, :] & (~mem_kpm)[:, :, None]
    memory = transformer_encoder(enc1_unpadded, params["encoder2"], mem_attn_mask,
                                 cfg["nhead"], cfg["num_kv_heads_encoder2"])

    embeddings = masked_mean_pool(memory, mem_kpm)
    if return_embeddings_only:
        return embeddings

    B_seq, W, _ = memory.shape
    memory_positions = sinusoidal_positional_encoding(W, D)

    # ---- sequence decoder branch ----
    T = seq_target_ids.shape[1]
    seq_tgt = jnp.take(emb, seq_target_ids, axis=0) + sinusoidal_positional_encoding(T, D)
    seq_dec = transformer_decoder(seq_tgt, memory + memory_positions,
                                  params["decoder"], seq_key_padding_mask,
                                  mem_kpm, cfg["nhead"])

    # ---- word decoder branch ----
    Tw = word_target_ids.shape[1]
    word_tgt = jnp.take(emb, word_target_ids, axis=0) + sinusoidal_positional_encoding(Tw, D)
    word_memory = flatten_and_filter_static(memory, mem_kpm_np)          # (N_words, 1, D)
    keep_idx = np.nonzero(get_eos_mask(sequence_ids))[0]
    word_memory = jnp.take(word_memory, jnp.asarray(keep_idx), axis=0)   # (Nw, 1, D)
    Nw = word_memory.shape[0]

    # Pad the length-1 memory to 8 keys with fully-masked extras (TPU-friendly
    # tiles); masked softmax makes the result numerically identical.
    MEMPAD = 8
    word_memory_p = jnp.concatenate(
        [word_memory, jnp.zeros((Nw, MEMPAD - 1, D), word_memory.dtype)], axis=1)
    word_mem_kpm = jnp.concatenate(
        [jnp.zeros((Nw, 1), bool), jnp.ones((Nw, MEMPAD - 1), bool)], axis=1)

    # NOTE: the reference forward calls self.decoder (not self.word_decoder) here;
    # we follow the code as written.
    word_dec = transformer_decoder(word_tgt, word_memory_p, params["decoder"],
                                   word_key_padding_mask, word_mem_kpm, cfg["nhead"])

    seq_logits = linear(seq_dec, params["out_w"], params["out_b"],
                        out_dtype=jnp.float32)[:, :-1, :]
    word_logits = linear(word_dec, params["out_w"], params["out_b"],
                         out_dtype=jnp.float32)[:, :-1, :]
    return embeddings, seq_logits, word_logits


# ---------------------------- parameter init ---------------------------------

def _normal(key, shape, scale=0.02, dtype=jnp.float32):
    return (scale * jax.random.normal(key, shape, jnp.float32)).astype(dtype)


def init_encoder_layer(key, D, nhead, num_kv, ff):
    hd = D // nhead
    ks = jax.random.split(key, 6)
    wq = _normal(ks[0], (D, nhead * hd))
    wk = _normal(ks[1], (D, num_kv * hd))
    wv = _normal(ks[2], (D, num_kv * hd))
    return {
        "ln1_g": jnp.ones((D,), jnp.float32), "ln1_b": jnp.zeros((D,), jnp.float32),
        "wqkv": jnp.concatenate([wq, wk, wv], axis=1).astype(jnp.bfloat16),
        "bqkv": jnp.zeros((nhead * hd + 2 * num_kv * hd,), jnp.float32),
        "wo": _normal(ks[3], (nhead * hd, D), dtype=jnp.bfloat16),
        "bo": jnp.zeros((D,), jnp.float32),
        "ln2_g": jnp.ones((D,), jnp.float32), "ln2_b": jnp.zeros((D,), jnp.float32),
        "w1": _normal(ks[4], (D, ff), dtype=jnp.bfloat16),
        "b1": jnp.zeros((ff,), jnp.float32),
        "w2": _normal(ks[5], (ff, D), dtype=jnp.bfloat16),
        "b2": jnp.zeros((D,), jnp.float32),
    }


def init_mha_self(key, D):
    ks = jax.random.split(key, 4)
    wq, wk, wv = (_normal(ks[0], (D, D)), _normal(ks[1], (D, D)),
                  _normal(ks[2], (D, D)))
    return {"wqkv": jnp.concatenate([wq, wk, wv], axis=1).astype(jnp.bfloat16),
            "bqkv": jnp.zeros((3 * D,), jnp.float32),
            "wo": _normal(ks[3], (D, D), dtype=jnp.bfloat16),
            "bo": jnp.zeros((D,), jnp.float32)}


def init_mha_cross(key, D):
    ks = jax.random.split(key, 4)
    wk, wv = _normal(ks[1], (D, D)), _normal(ks[2], (D, D))
    return {"wq": _normal(ks[0], (D, D), dtype=jnp.bfloat16),
            "bq": jnp.zeros((D,), jnp.float32),
            "wkv": jnp.concatenate([wk, wv], axis=1).astype(jnp.bfloat16),
            "bkv": jnp.zeros((2 * D,), jnp.float32),
            "wo": _normal(ks[3], (D, D), dtype=jnp.bfloat16),
            "bo": jnp.zeros((D,), jnp.float32)}


def init_decoder_layer(key, D, ff):
    ks = jax.random.split(key, 4)
    return {
        "ln1_g": jnp.ones((D,), jnp.float32), "ln1_b": jnp.zeros((D,), jnp.float32),
        "self_attn": init_mha_self(ks[0], D),
        "ln2_g": jnp.ones((D,), jnp.float32), "ln2_b": jnp.zeros((D,), jnp.float32),
        "cross_attn": init_mha_cross(ks[1], D),
        "ln3_g": jnp.ones((D,), jnp.float32), "ln3_b": jnp.zeros((D,), jnp.float32),
        "w1": _normal(ks[2], (D, ff), dtype=jnp.bfloat16),
        "b1": jnp.zeros((ff,), jnp.float32),
        "w2": _normal(ks[3], (ff, D), dtype=jnp.bfloat16),
        "b2": jnp.zeros((D,), jnp.float32),
    }


def init_params(key, cfg):
    keys = jax.random.split(key, 5)
    D, ff, V = cfg["d_model"], cfg["dim_feedforward"], cfg["vocab_size"]
    return {
        "embedding": _normal(keys[0], (V, D), dtype=jnp.bfloat16),
        "encoder1": [init_encoder_layer(k, D, cfg["nhead"], cfg["num_kv_heads_encoder1"], ff)
                     for k in jax.random.split(keys[1], cfg["num_encoder1_layers"])],
        "encoder2": [init_encoder_layer(k, D, cfg["nhead"], cfg["num_kv_heads_encoder2"], ff)
                     for k in jax.random.split(keys[2], cfg["num_encoder2_layers"])],
        "decoder": [init_decoder_layer(k, D, ff)
                    for k in jax.random.split(keys[3], cfg["num_decoder_layers"])],
        # TODO(synk): word_decoder params exist in the reference __init__ but its
        # forward() uses self.decoder for both branches; we follow the code.
        "out_w": _normal(keys[4], (D, V), dtype=jnp.bfloat16),
        "out_b": jnp.zeros((V,), jnp.float32),
    }


# ---------------------------------- main --------------------------------------

if __name__ == "__main__":
    cfg = dict(vocab_size=64, d_model=32, nhead=4,
               num_kv_heads_encoder1=2, num_kv_heads_encoder2=2,
               dim_feedforward=64,
               num_encoder1_layers=1, num_encoder2_layers=1, num_decoder_layers=1)

    key = jax.random.PRNGKey(0)
    pkey, dkey = jax.random.split(key)
    params = init_params(pkey, cfg)

    R, S = 4, 16                                # packed rows, tokens per row
    word_boundaries = [[(0, 4), (4, 8), (8, 12), (12, 16)] for _ in range(R)]
    sequence_ids = np.array([0] * 8 + [1] * 8, np.int32)   # one id per word
    num_seqs = 2
    T_seq, T_word = 8, 8
    n_words_kept = int(np.sum(get_eos_mask(sequence_ids)))  # words minus one EOS per seq

    dks = jax.random.split(dkey, 3)
    x_tokens = jax.random.randint(dks[0], (R, S), 0, cfg["vocab_size"], jnp.int32)
    seq_target_ids = jax.random.randint(dks[1], (num_seqs, T_seq), 0, cfg["vocab_size"], jnp.int32)
    word_target_ids = jax.random.randint(dks[2], (n_words_kept, T_word), 0, cfg["vocab_size"], jnp.int32)
    seq_kpm = jnp.zeros((num_seqs, T_seq), bool)
    word_kpm = jnp.zeros((n_words_kept, T_word), bool)
    attention_mask = jnp.ones((R, S, S), bool)

    embeddings, seq_logits, word_logits = encodzall_forward(
        params, cfg, x_tokens, sequence_ids, seq_target_ids, seq_kpm,
        word_target_ids, word_kpm, attention_mask, word_boundaries)

    jax.block_until_ready((embeddings, seq_logits, word_logits))
    assert embeddings.shape == (num_seqs, cfg["d_model"])
    assert seq_logits.shape == (num_seqs, T_seq - 1, cfg["vocab_size"])
    assert word_logits.shape == (n_words_kept, T_word - 1, cfg["vocab_size"])
    print("KERNEL_OK")
</pallas_src>

<mosaic_0001>
module attributes {stable_mosaic.version = 11 : i64} {
  func.func @_layernorm_kernel(%arg0: i32, %arg1: memref<64x32xbf16, #tpu.memory_space<vmem>>, %arg2: memref<1x32xf32, #tpu.memory_space<vmem>>, %arg3: memref<1x32xf32, #tpu.memory_space<vmem>>, %arg4: memref<64x32xbf16, #tpu.memory_space<vmem>>) attributes {dimension_semantics = [#tpu.dimension_semantics<parallel>], iteration_bounds = array<i64: 1>, scalar_prefetch = 0 : i64, scratch_operands = 0 : i64, tpu.core_type = #tpu.core_type<tc>, window_params = [{transform_indices = @transform_0, window_bounds = array<i64: 64, 32>}, {pipeline_mode = #tpu.pipeline_mode<synchronous>, transform_indices = @transform_1, window_bounds = array<i64: 1, 32>}, {pipeline_mode = #tpu.pipeline_mode<synchronous>, transform_indices = @transform_2, window_bounds = array<i64: 1, 32>}, {transform_indices = @transform_3, window_bounds = array<i64: 64, 32>}]} {
    %c0 = arith.constant 0 : index
    %c0_0 = arith.constant 0 : index
    %0 = vector.load %arg1[%c0, %c0_0] : memref<64x32xbf16, #tpu.memory_space<vmem>>, vector<64x32xbf16>
    %1 = arith.extf %0 : vector<64x32xbf16> to vector<64x32xf32>
    %cst = arith.constant dense<0.000000e+00> : vector<64xf32>
    %2 = vector.multi_reduction <add>, %1, %cst [1] : vector<64x32xf32> to vector<64xf32>
    %3 = vector.shape_cast %2 : vector<64xf32> to vector<64x1xf32>
    %cst_1 = arith.constant 3.200000e+01 : f32
    %4 = vector.broadcast %cst_1 : f32 to vector<64x1xf32>
    %5 = arith.divf %3, %4 : vector<64x1xf32>
    %6 = vector.broadcast %5 : vector<64x1xf32> to vector<64x32xf32>
    %7 = arith.subf %1, %6 : vector<64x32xf32>
    %8 = arith.mulf %7, %7 : vector<64x32xf32>
    %cst_2 = arith.constant dense<0.000000e+00> : vector<64xf32>
    %9 = vector.multi_reduction <add>, %8, %cst_2 [1] : vector<64x32xf32> to vector<64xf32>
    %10 = vector.shape_cast %9 : vector<64xf32> to vector<64x1xf32>
    %cst_3 = arith.constant 3.200000e+01 : f32
    %11 = vector.broadcast %cst_3 : f32 to vector<64x1xf32>
    %12 = arith.divf %10, %11 : vector<64x1xf32>
    %13 = vector.broadcast %5 : vector<64x1xf32> to vector<64x32xf32>
    %14 = arith.subf %1, %13 : vector<64x32xf32>
    %cst_4 = arith.constant 9.99999974E-6 : f32
    %15 = vector.broadcast %cst_4 : f32 to vector<64x1xf32>
    %16 = arith.addf %12, %15 : vector<64x1xf32>
    %17 = math.rsqrt %16 : vector<64x1xf32>
    %18 = vector.broadcast %17 : vector<64x1xf32> to vector<64x32xf32>
    %19 = arith.mulf %14, %18 : vector<64x32xf32>
    %c0_5 = arith.constant 0 : index
    %c0_6 = arith.constant 0 : index
    %20 = vector.load %arg2[%c0_5, %c0_6] : memref<1x32xf32, #tpu.memory_space<vmem>>, vector<1x32xf32>
    %21 = vector.broadcast %20 : vector<1x32xf32> to vector<64x32xf32>
    %22 = arith.mulf %19, %21 : vector<64x32xf32>
    %c0_7 = arith.constant 0 : index
    %c0_8 = arith.constant 0 : index
    %23 = vector.load %arg3[%c0_7, %c0_8] : memref<1x32xf32, #tpu.memory_space<vmem>>, vector<1x32xf32>
    %24 = vector.broadcast %23 : vector<1x32xf32> to vector<64x32xf32>
    %25 = arith.addf %22, %24 : vector<64x32xf32>
    %26 = arith.truncf %25 : vector<64x32xf32> to vector<64x32xbf16>
    %c0_9 = arith.constant 0 : index
    %c0_10 = arith.constant 0 : index
    %27 = vector.load %arg4[%c0_9, %c0_10] : memref<64x32xbf16, #tpu.memory_space<vmem>>, vector<64x32xbf16>
    tpu.vector_store %arg4[%c0_9, %c0_10], %26 {strides = array<i32>} : memref<64x32xbf16, #tpu.memory_space<vmem>>, vector<64x32xbf16>,
    return
  }
  func.func @transform_0(%arg0: i32) -> (i32, i32) {
    %c0_i32 = arith.constant 0 : i32
    %c0_i32_0 = arith.constant 0 : i32
    return %arg0, %c0_i32 : i32, i32
  }
  func.func @transform_1(%arg0: i32) -> (i32, i32) {
    %c0_i32 = arith.constant 0 : i32
    %c0_i32_0 = arith.constant 0 : i32
    %c0_i32_1 = arith.constant 0 : i32
    return %c0_i32, %c0_i32_0 : i32, i32
  }
  func.func @transform_2(%arg0: i32) -> (i32, i32) {
    %c0_i32 = arith.constant 0 : i32
    %c0_i32_0 = arith.constant 0 : i32
    %c0_i32_1 = arith.constant 0 : i32
    return %c0_i32, %c0_i32_0 : i32, i32
  }
  func.func @transform_3(%arg0: i32) -> (i32, i32) {
    %c0_i32 = arith.constant 0 : i32
    %c0_i32_0 = arith.constant 0 : i32
    return %arg0, %c0_i32 : i32, i32
  }
}

</mosaic_0001>

<bundles_post_ra>
// kernel: tpu_custom_call.1
= control target key start
LH: loop header
LB: loop body
LE: loop exit
PB: predicated region body
PF: predicated region fallthrough
CT: control target
= control target key end

     0   :  { %vm30_vm0 = vcmask 261120   ;;  %vm198_vm1 = vcmask 257024   ;;  %s390_s0 = inlined_call_operand.vmem [shape: bf16[64,32], index: 0, kind: input, shape index: {}]   ;;  %s391_s1 = inlined_call_operand.vmem [shape: f32[1,32], index: 1, kind: input, shape index: {}]   ;;  %s392_s2 = inlined_call_operand.vmem [shape: f32[1,32], index: 2, kind: input, shape index: {}]   ;;  %s393_s3 = inlined_call_operand.vmem [shape: bf16[64,32], index: 3, kind: output, shape index: {}]  }
   0x1   :  { %v230_v0 = vld [vmem:[%s390_s0] sm:$0xff]   ;;  %v245_v1 = vld [vmem:[%s390_s0 + $0x8] sm:$0xff]   ;;  %v246_v6 = vld [vmem:[%s390_s0 + $0x10] sm:$0xff]  }
   0x2   :  { %v231_v2 = vunpack.c.l.bf16 %v230_v0  ;;  %v235_v3 = vunpack.c.l.bf16 %v245_v1  ;;  %v232_v4 = vunpack.c.h.bf16 %v230_v0  ;;  %v236_v5 = vunpack.c.h.bf16 %v245_v1  ;;  %v247_v13 = vld [vmem:[%s390_s0 + $0x18] sm:$0xff]  }
   0x3   :  { %v239_v11 = vunpack.c.l.bf16 %v246_v6  ;;  %v240_v12 = vunpack.c.h.bf16 %v246_v6  ;;  %v243_v16 = vunpack.c.l.bf16 %v247_v13  ;;  %v244_v17 = vunpack.c.h.bf16 %v247_v13 }
   0x4   :  { %v31_v7 = vsel %vm30_vm0, %v231_v2, 0.0  ;;  %v37_v8 = vsel %vm30_vm0, %v235_v3, 0.0  ;;  %v34_v9 = vsel %vm30_vm0, %v232_v4, 0.0  ;;  %v40_v10 = vsel %vm30_vm0, %v236_v5, 0.0 }
   0x5   :  { %32 = vadd.xlane.f32.xlu0 %v31_v7  ;;  %38 = vadd.xlane.f32.xlu1 %v37_v8  ;;  %v43_v14 = vsel %vm30_vm0, %v239_v11, 0.0  ;;  %v46_v15 = vsel %vm30_vm0, %v240_v12, 0.0  ;;  %v49_v18 = vsel %vm30_vm0, %v243_v16, 0.0  ;;  %v52_v19 = vsel %vm30_vm0, %v244_v17, 0.0 }
   0x9   :  { %35 = vadd.xlane.f32.xlu0 %v34_v9  ;;  %41 = vadd.xlane.f32.xlu1 %v40_v10 }
   0xd   :  { %44 = vadd.xlane.f32.xlu0 %v43_v14  ;;  %47 = vadd.xlane.f32.xlu1 %v46_v15 }
  0x11   :  { %50 = vadd.xlane.f32.xlu0 %v49_v18  ;;  %53 = vadd.xlane.f32.xlu1 %v52_v19 }
  0x92   :  { %v33_v20 = vpop.xlane.xlu0 %32  ;;  %v39_v21 = vpop.xlane.xlu1 %38 }
  0x93   :  { %v56_v22 = vmul.f32 0.03125, %v33_v20  ;;  %v58_v23 = vmul.f32 0.03125, %v39_v21  ;;  %v212_v21 = vld [vmem:[%s392_s2] ss:$0 sm:$0xff] }
  0x95   :  { %v304_v24 = vsub.f32 %v231_v2, %v56_v22  ;;  %v306_v25 = vsub.f32 %v235_v3, %v58_v23 }
  0x96   :  { %v36_v26 = vpop.xlane.xlu0 %35  ;;  %v42_v27 = vpop.xlane.xlu1 %41 }
  0x97   :  { %v57_v28 = vmul.f32 0.03125, %v36_v26  ;;  %v59_v29 = vmul.f32 0.03125, %v42_v27  ;;  %v72_v30 = vmul.f32 %v304_v24, %v304_v24  ;;  %v74_v31 = vmul.f32 %v306_v25, %v306_v25 }
  0x99   :  { %v312_v32 = vsub.f32 %v232_v4, %v57_v28  ;;  %v314_v33 = vsub.f32 %v236_v5, %v59_v29  ;;  %v80_v34 = vsel %vm30_vm0, %v72_v30, 0.0  ;;  %v86_v37 = vsel %vm30_vm0, %v74_v31, 0.0 }
  0x9a   :  { %81 = vadd.xlane.f32.xlu0 %v80_v34  ;;  %v45_v35 = vpop.xlane.xlu0 %44  ;;  %v48_v36 = vpop.xlane.xlu1 %47 }
  0x9b   :  { %v60_v38 = vmul.f32 0.03125, %v45_v35  ;;  %v61_v39 = vmul.f32 0.03125, %v48_v36  ;;  %v73_v40 = vmul.f32 %v312_v32, %v312_v32  ;;  %v75_v41 = vmul.f32 %v314_v33, %v314_v33 }
  0x9d   :  { %v322_v42 = vsub.f32 %v239_v11, %v60_v38  ;;  %v324_v43 = vsub.f32 %v240_v12, %v61_v39  ;;  %v83_v44 = vsel %vm30_vm0, %v73_v40, 0.0  ;;  %v89_v47 = vsel %vm30_vm0, %v75_v41, 0.0 }
  0x9e   :  { %87 = vadd.xlane.f32.xlu0 %v86_v37  ;;  %84 = vadd.xlane.f32.xlu1 %v83_v44  ;;  %v51_v45 = vpop.xlane.xlu0 %50  ;;  %v54_v46 = vpop.xlane.xlu1 %53 }
  0x9f   :  { %v62_v48 = vmul.f32 0.03125, %v51_v45  ;;  %v63_v49 = vmul.f32 0.03125, %v54_v46  ;;  %v76_v50 = vmul.f32 %v322_v42, %v322_v42  ;;  %v77_v51 = vmul.f32 %v324_v43, %v324_v43 }
  0xa1   :  { %v332_v52 = vsub.f32 %v243_v16, %v62_v48  ;;  %v334_v53 = vsub.f32 %v244_v17, %v63_v49  ;;  %v92_v54 = vsel %vm30_vm0, %v76_v50, 0.0  ;;  %v95_v55 = vsel %vm30_vm0, %v77_v51, 0.0  ;;  %v211_v16 = vld [vmem:[%s391_s1] ss:$0 sm:$0xff] }
  0xa2   :  { %90 = vadd.xlane.f32.xlu1 %v89_v47  ;;  %93 = vadd.xlane.f32.xlu0 %v92_v54 }
  0xa3   :  { %v78_v56 = vmul.f32 %v332_v52, %v332_v52  ;;  %v79_v57 = vmul.f32 %v334_v53, %v334_v53 }
  0xa5   :  { %v98_v58 = vsel %vm30_vm0, %v78_v56, 0.0  ;;  %v101_v59 = vsel %vm30_vm0, %v79_v57, 0.0 }
  0xa6   :  { %96 = vadd.xlane.f32.xlu1 %v95_v55  ;;  %99 = vadd.xlane.f32.xlu0 %v98_v58 }
  0xaa   :  { %102 = vadd.xlane.f32.xlu1 %v101_v59 }
 0x127   :  { %v82_v60 = vpop.xlane.xlu0 %81 }
 0x128   :  { %v104_v61 = vmul.f32 0.03125, %v82_v60 }
 0x12a   :  { %v112_v62 = vadd.f32 1e-05, %v104_v61 }
 0x12b   :  { %v85_v63 = vpop.xlane.xlu1 %84  ;;  %v88_v0 = vpop.xlane.xlu0 %87 }
 0x12c   :  { %248 = vrsqrt.f32 %v112_v62  ;;  %v105_v1 = vmul.f32 0.03125, %v85_v63  ;;  %v106_v2 = vmul.f32 0.03125, %v88_v0 }
 0x12e   :  { %v113_v3 = vadd.f32 1e-05, %v105_v1  ;;  %v114_v4 = vadd.f32 1e-05, %v106_v2 }
 0x12f   :  { %v91_v5 = vpop.xlane.xlu1 %90  ;;  %v94_v6 = vpop.xlane.xlu0 %93 }
 0x130   :  { %250 = vrsqrt.f32 %v113_v3  ;;  %v107_v7 = vmul.f32 0.03125, %v91_v5  ;;  %v108_v8 = vmul.f32 0.03125, %v94_v6 }
 0x131   :  { %252 = vrsqrt.f32 %v114_v4 }
 0x132   :  { %v115_v9 = vadd.f32 1e-05, %v107_v7  ;;  %v116_v10 = vadd.f32 1e-05, %v108_v8 }
 0x133   :  { %v97_v11 = vpop.xlane.xlu1 %96  ;;  %v100_v12 = vpop.xlane.xlu0 %99 }
 0x134   :  { %254 = vrsqrt.f32 %v115_v9  ;;  %v109_v13 = vmul.f32 0.03125, %v97_v11  ;;  %v110_v14 = vmul.f32 0.03125, %v100_v12 }
 0x135   :  { %256 = vrsqrt.f32 %v116_v10 }
 0x136   :  { %v249_v15 = vpop.eup %248  ;;  %v117_v17 = vadd.f32 1e-05, %v109_v13  ;;  %v118_v18 = vadd.f32 1e-05, %v110_v14 }
 0x137   :  { %v128_v19 = vmul.f32 %v249_v15, %v304_v24  ;;  %v103_v20 = vpop.xlane.xlu1 %102 }
 0x138   :  { %258 = vrsqrt.f32 %v117_v17  ;;  %v111_v22 = vmul.f32 0.03125, %v103_v20 }
 0x139   :  { %v143_v23 = vmul.f32 %v211_v16, %v128_v19  ;;  %260 = vrsqrt.f32 %v118_v18 }
 0x13a   :  { %v251_v26 = vpop.eup %250  ;;  %v119_v27 = vadd.f32 1e-05, %v111_v22 }
 0x13b   :  { %v253_v28 = vpop.eup %252  ;;  %v158_v29 = vadd.f32 %v212_v21, %v143_v23  ;;  %v129_v30 = vmul.f32 %v251_v26, %v312_v32 }
 0x13c   :  { %v130_v31 = vmul.f32 %v253_v28, %v306_v25  ;;  %262 = vrsqrt.f32 %v119_v27 }
 0x13d   :  { %v221_v24 = vpack.c.bf16 %v158_v29, %v158_v29  ;;  %v144_v34 = vmul.f32 %v211_v16, %v129_v30 }
 0x13e   :  { %v255_v35 = vpop.eup %254  ;;  %v145_v36 = vmul.f32 %v211_v16, %v130_v31 }
 0x13f   :  { %v257_v37 = vpop.eup %256  ;;  %199 = vst.msk [vmem:[%s393_s3] sm:$0xf] %vm198_vm1, %v221_v24  ;;  %v159_v38 = vadd.f32 %v212_v21, %v144_v34  ;;  %v131_v39 = vmul.f32 %v255_v35, %v314_v33 }
 0x140   :  { %v160_v40 = vadd.f32 %v212_v21, %v145_v36  ;;  %v132_v32 = vmul.f32 %v257_v37, %v322_v42 }
 0x141   :  { %v222_v41 = vpack.c.bf16 %v159_v38, %v159_v38  ;;  %v146_v44 = vmul.f32 %v211_v16, %v131_v39 }
 0x142   :  { %v259_v25 = vpop.eup %258  ;;  %v223_v45 = vpack.c.bf16 %v160_v40, %v160_v40  ;;  %v147_v46 = vmul.f32 %v211_v16, %v132_v32 }
 0x143   :  { %v261_v47 = vpop.eup %260  ;;  %200 = vst.msk [vmem:[%s393_s3 + $0x4] sm:$0xf] %vm198_vm1, %v222_v41  ;;  %v161_v48 = vadd.f32 %v212_v21, %v146_v44  ;;  %v133_v49 = vmul.f32 %v259_v25, %v324_v43 }
 0x144   :  { %201 = vst.msk [vmem:[%s393_s3 + $0x8] sm:$0xf] %vm198_vm1, %v223_v45  ;;  %v162_v33 = vadd.f32 %v212_v21, %v147_v46  ;;  %v134_v42 = vmul.f32 %v261_v47, %v332_v52 }
 0x145   :  { %v224_v50 = vpack.c.bf16 %v161_v48, %v161_v48  ;;  %v148_v51 = vmul.f32 %v211_v16, %v133_v49 }
 0x146   :  { %v263_v54 = vpop.eup %262  ;;  %v225_v55 = vpack.c.bf16 %v162_v33, %v162_v33  ;;  %v149_v56 = vmul.f32 %v211_v16, %v134_v42 }
 0x147   :  { %202 = vst.msk [vmem:[%s393_s3 + $0xc] sm:$0xf] %vm198_vm1, %v224_v50  ;;  %v163_v57 = vadd.f32 %v212_v21, %v148_v51  ;;  %v135_v43 = vmul.f32 %v263_v54, %v334_v53 }
 0x148   :  { %203 = vst.msk [vmem:[%s393_s3 + $0x10] sm:$0xf] %vm198_vm1, %v225_v55  ;;  %v164_v58 = vadd.f32 %v212_v21, %v149_v56 }
 0x149   :  { %v226_v52 = vpack.c.bf16 %v163_v57, %v163_v57  ;;  %v150_v59 = vmul.f32 %v211_v16, %v135_v43 }
 0x14a   :  { %v227_v60 = vpack.c.bf16 %v164_v58, %v164_v58 }
 0x14b   :  { %204 = vst.msk [vmem:[%s393_s3 + $0x14] sm:$0xf] %vm198_vm1, %v226_v52  ;;  %v165_v61 = vadd.f32 %v212_v21, %v150_v59 }
 0x14c   :  { %205 = vst.msk [vmem:[%s393_s3 + $0x18] sm:$0xf] %vm198_vm1, %v227_v60 }
 0x14d   :  { %v228_v53 = vpack.c.bf16 %v165_v61, %v165_v61 }
 0x14f   :  { %206 = vst.msk [vmem:[%s393_s3 + $0x1c] sm:$0xf] %vm198_vm1, %v228_v53 }

</bundles_post_ra>
